<compile_context>
chip_gen: v7x
topology: tpu7x:2x2x1
jax: 0.10.0
libtpu: 0.0.40
codegen_flags: <defaults>
</compile_context>

<pallas_src>
import functools

import numpy as np
import jax
import jax.numpy as jnp
from jax.experimental import pallas as pl
from jax.experimental.pallas import tpu as pltpu


# ----------------------------------------------------------------------------
# pltpu.roll convention probe (guards the shift sign used for conv taps)
# ----------------------------------------------------------------------------
def _roll_probe_kernel(x_ref, o_ref):
    o_ref[...] = pltpu.roll(x_ref[...], 1, 0)


def detect_roll_convention():
    x = jnp.arange(8 * 128, dtype=jnp.float32).reshape(8, 128)
    out = pl.pallas_call(
        _roll_probe_kernel,
        out_shape=jax.ShapeDtypeStruct((8, 128), jnp.float32),
        in_specs=[pl.BlockSpec(memory_space=pltpu.MemorySpace.VMEM)],
        out_specs=pl.BlockSpec(memory_space=pltpu.MemorySpace.VMEM),
    )(x)
    return bool(jnp.allclose(out, jnp.roll(x, 1, axis=0)))


# ----------------------------------------------------------------------------
# Fused VQ-VAE kernel (one grid step == one image)
# ----------------------------------------------------------------------------
def _vqvae_kernel(
    # ---- inputs ----
    x_ref, s1_ref, s2_ref, p1_ref, emb_ref,
    ec1_w_ref, ec1_b_ref, ec2_w_ref, ec2_b_ref, ec3_w_ref, ec3_b_ref,
    er3_w_ref, er1_w_ref, pvq_w_ref, pvq_b_ref,
    dc1_w_ref, dc1_b_ref, dr3_w_ref, dr1_w_ref,
    dt1_w_ref, dt1_b_ref, dt2_w_ref, dt2_b_ref,
    # ---- outputs ----
    z_ref, q_ref, counts_ref, recon_ref,
    # ---- static config ----
    *, H0, num_res_layers, nh, nrh, emb_dim, K, roll_matches_jnp):
    f32 = jnp.float32
    bf16 = jnp.bfloat16
    H1, H2 = H0 // 2, H0 // 4
    M1, M2 = H1 * H1, H2 * H2

    mask_cache = {}   # trace-time cache: one iota/mask per (res, offset)

    def shifted(x, H, W, dh, dw):
        """Rows of result hold x at (h+dh, w+dw); zero outside the HxW image."""
        if dh == 0 and dw == 0:
            return x
        M = H * W
        d = dh * W + dw
        amt = (-d) % M if roll_matches_jnp else d % M
        y = pltpu.roll(x, amt, 0)                      # sublane rotate (XLU)
        key = (H, W, dh, dw)
        if key not in mask_cache:
            r = jax.lax.broadcasted_iota(jnp.int32, (M, 1), 0)
            h = r // W
            w = r % W
            mask_cache[key] = ((h + dh >= 0) & (h + dh < H) &
                               (w + dw >= 0) & (w + dw < W))
        return jnp.where(mask_cache[key], y, 0.0)

    def mxu(a, b):
        # bf16 operands, f32 accumulation (MXU fast path on v6e / v7x)
        return jnp.dot(a.astype(bf16), b.astype(bf16),
                       preferred_element_type=f32)

    def conv_same(x, H, W, w_ref, cin, k, pad, row0=0,
                  bias=None, relu_in=False, relu_out=False):
        """'Same-index' stride-1 conv: out[h,w] = sum_taps x[h-pad+i, w-pad+j] @ W."""
        if relu_in:
            x = jnp.maximum(x, 0.0)
        acc = None
        for i in range(k):
            for j in range(k):
                t = i * k + j
                wt = w_ref[row0 + t * cin: row0 + (t + 1) * cin, :]
                c = mxu(shifted(x, H, W, i - pad, j - pad), wt)
                acc = c if acc is None else acc + c
        if bias is not None:
            acc = acc + bias
        if relu_out:
            acc = jnp.maximum(acc, 0.0)
        return acc

    def residual_stack(x, H, W, w3_ref, w1_ref):
        for l in range(num_res_layers):
            t = conv_same(x, H, W, w3_ref, nh, 3, 1, row0=l * 9 * nh,
                          relu_in=True, relu_out=True)
            t = mxu(t, w1_ref[l * nrh:(l + 1) * nrh, :])   # 1x1, no bias
            x = x + t
        return jnp.maximum(x, 0.0)                          # stack's final ReLU

    # sub-pixel decomposition of ConvTranspose2d(k=4, s=2, p=1):
    #   even output phase <- input offsets {-1 (tap 3), 0 (tap 1)}
    #   odd  output phase <- input offsets { 0 (tap 2), 1 (tap 0)}
    _T0 = ((-1, 3), (0, 1))
    _T1 = ((0, 2), (1, 0))

    def conv_transpose_phases(x, H, W, wt_ref, cin, bias, relu_out):
        phases = []
        for hterms in (_T0, _T1):
            for wterms in (_T0, _T1):
                acc = None
                for (dh, kh) in hterms:
                    for (dw, kw) in wterms:
                        t = kh * 4 + kw
                        wt = wt_ref[t * cin:(t + 1) * cin, :]
                        c = mxu(shifted(x, H, W, dh, dw), wt)
                        acc = c if acc is None else acc + c
                acc = acc + bias
                if relu_out:
                    acc = jnp.maximum(acc, 0.0)
                phases.append(acc)          # order: (0,0),(0,1),(1,0),(1,1)
        return phases

    x = x_ref[...].astype(f32)                                 # (H0*H0, 3)

    # ---------------- Encoder ----------------
    h = conv_same(x, H0, H0, ec1_w_ref, 3, 4, 1)               # 4x4 taps @ 16x16
    h = jnp.dot(s1_ref[...], h, preferred_element_type=f32)    # stride-2 select
    h = jnp.maximum(h + ec1_b_ref[...], 0.0)                   # (M1, nh/2)

    h = conv_same(h, H1, H1, ec2_w_ref, nh // 2, 4, 1)
    h = jnp.dot(s2_ref[...], h, preferred_element_type=f32)
    h = jnp.maximum(h + ec2_b_ref[...], 0.0)                   # (M2, nh)

    h = conv_same(h, H2, H2, ec3_w_ref, nh, 3, 1, bias=ec3_b_ref[...])
    h = residual_stack(h, H2, H2, er3_w_ref, er1_w_ref)        # incl. final ReLU

    z = mxu(h, pvq_w_ref[...]) + pvq_b_ref[...]                # (M2, emb_dim)

    # ---------------- Vector quantizer (fused, z still in VMEM) -------------
    e = emb_ref[...]                                           # (K, emb_dim)
    d = (jnp.sum(e * e, axis=1)[None, :]
         - 2.0 * jnp.dot(z, e.T, preferred_element_type=f32))  # (M2, K)
    min_d = jnp.min(d, axis=1, keepdims=True)
    iota = jax.lax.broadcasted_iota(jnp.int32, d.shape, 1)
    idx = jnp.min(jnp.where(d <= min_d, iota, K), axis=1, keepdims=True)
    onehot = (iota == idx).astype(f32)                         # (M2, K)
    q = jnp.dot(onehot, e, preferred_element_type=f32)         # (M2, emb_dim)

    z_ref[...] = z
    q_ref[...] = q
    # per-image code counts (broadcast over 8 sublanes to keep the block tiled)
    counts_ref[...] = jnp.zeros((8, K), f32) + jnp.sum(onehot, axis=0,
                                                       keepdims=True)

    # ---------------- Decoder ----------------
    h = conv_same(q, H2, H2, dc1_w_ref, emb_dim, 3, 1, bias=dc1_b_ref[...])
    h = residual_stack(h, H2, H2, dr3_w_ref, dr1_w_ref)

    # conv_trans_1 (4x4, s2) + ReLU, via sub-pixel phases at 4x4 resolution
    ph1 = conv_transpose_phases(h, H2, H2, dt1_w_ref, nh,
                                dt1_b_ref[...], relu_out=True)
    # interleave the 4 phases into the 8x8 grid with a precomputed permutation
    h = None
    for p in range(4):
        c = jnp.dot(p1_ref[p * M1:(p + 1) * M1, :], ph1[p],
                    preferred_element_type=f32)
        h = c if h is None else h + c                          # (M1, nh/2)

    # conv_trans_2 (4x4, s2): emit the 4 output phases, wrapper interleaves.
    ph2 = conv_transpose_phases(h, H1, H1, dt2_w_ref, nh // 2,
                                dt2_b_ref[...], relu_out=False)
    for p in range(4):
        recon_ref[p * M1:(p + 1) * M1, :] = ph2[p]


# ----------------------------------------------------------------------------
# Wrapper-side constant matrices and weight re-layout
# ----------------------------------------------------------------------------
def _stride2_select(h):
    """0/1 matrix picking the even (h, w) rows of an h*h 'same' conv map."""
    ho = h // 2
    s = np.zeros((ho * ho, h * h), np.float32)
    for a in range(ho):
        for b in range(ho):
            s[a * ho + b, (2 * a) * h + 2 * b] = 1.0
    return s


def _phase_interleave(h_in):
    """Permutation mapping 4 sub-pixel phases at h_in x h_in to 2h x 2h rows."""
    h_out = 2 * h_in
    p = np.zeros((4, h_out * h_out, h_in * h_in), np.float32)
    for ph in range(2):
        for pw in range(2):
            k = ph * 2 + pw
            for a in range(h_in):
                for b in range(h_in):
                    p[k, (2 * a + ph) * h_out + (2 * b + pw), a * h_in + b] = 1.0
    return p.reshape(4 * h_out * h_out, h_in * h_in)


def _conv_w(w_oihw):
    """PyTorch Conv2d weight (Cout,Cin,kh,kw) -> tap-stacked (kh*kw*Cin, Cout)."""
    co, ci, kh, kw = w_oihw.shape
    return jnp.transpose(w_oihw, (2, 3, 1, 0)).reshape(kh * kw * ci, co)


def _convT_w(w_iokk):
    """PyTorch ConvTranspose2d weight (Cin,Cout,kh,kw) -> (kh*kw*Cin, Cout)."""
    ci, co, kh, kw = w_iokk.shape
    return jnp.transpose(w_iokk, (2, 3, 0, 1)).reshape(kh * kw * ci, co)


def _bias(b):
    return b.reshape(1, -1).astype(jnp.float32)


# ----------------------------------------------------------------------------
# Model forward (single fused pallas_call)
# ----------------------------------------------------------------------------
def model_forward(params, x_nchw, commitment_cost, roll_matches_jnp=True):
    N, cin, H0, W0 = x_nchw.shape
    assert cin == 3 and H0 == W0 and H0 % 4 == 0
    nh = params["enc_c2_w"].shape[0]
    nrh = params["enc_res"][0][0].shape[0]
    K, emb_dim = params["embedding"].shape
    L = len(params["enc_res"])

    H1, H2 = H0 // 2, H0 // 4
    M0, M2 = H0 * H0, H2 * H2

    x_flat = jnp.transpose(x_nchw, (0, 2, 3, 1)).reshape(N * M0, 3)
    x_flat = x_flat.astype(jnp.float32)

    S1 = jnp.asarray(_stride2_select(H0))
    S2 = jnp.asarray(_stride2_select(H1))
    P1 = jnp.asarray(_phase_interleave(H2))

    er3 = jnp.concatenate([_conv_w(w3) for (w3, _) in params["enc_res"]], axis=0)
    er1 = jnp.concatenate([_conv_w(w1) for (_, w1) in params["enc_res"]], axis=0)
    dr3 = jnp.concatenate([_conv_w(w3) for (w3, _) in params["dec_res"]], axis=0)
    dr1 = jnp.concatenate([_conv_w(w1) for (_, w1) in params["dec_res"]], axis=0)

    ins = [
        x_flat, S1, S2, P1, params["embedding"].astype(jnp.float32),
        _conv_w(params["enc_c1_w"]), _bias(params["enc_c1_b"]),
        _conv_w(params["enc_c2_w"]), _bias(params["enc_c2_b"]),
        _conv_w(params["enc_c3_w"]), _bias(params["enc_c3_b"]),
        er3, er1,
        _conv_w(params["prevq_w"]), _bias(params["prevq_b"]),
        _conv_w(params["dec_c1_w"]), _bias(params["dec_c1_b"]),
        dr3, dr1,
        _convT_w(params["dec_t1_w"]), _bias(params["dec_t1_b"]),
        _convT_w(params["dec_t2_w"]), _bias(params["dec_t2_b"]),
    ]
    in_specs = [pl.BlockSpec((M0, 3), lambda n: (n, 0))] + [
        pl.BlockSpec(a.shape, lambda n: (0, 0)) for a in ins[1:]
    ]

    out_shape = (
        jax.ShapeDtypeStruct((N * M2, emb_dim), jnp.float32),   # z (pre-VQ)
        jax.ShapeDtypeStruct((N * M2, emb_dim), jnp.float32),   # quantized
        jax.ShapeDtypeStruct((N * 8, K), jnp.float32),          # per-image counts
        jax.ShapeDtypeStruct((N * M0, 3), jnp.float32),         # recon phases
    )
    out_specs = (
        pl.BlockSpec((M2, emb_dim), lambda n: (n, 0)),
        pl.BlockSpec((M2, emb_dim), lambda n: (n, 0)),
        pl.BlockSpec((8, K), lambda n: (n, 0)),
        pl.BlockSpec((M0, 3), lambda n: (n, 0)),
    )

    kernel = functools.partial(
        _vqvae_kernel, H0=H0, num_res_layers=L, nh=nh, nrh=nrh,
        emb_dim=emb_dim, K=K, roll_matches_jnp=roll_matches_jnp)

    z, q, counts, recon = pl.pallas_call(
        kernel,
        grid=(N,),
        in_specs=in_specs,
        out_specs=out_specs,
        out_shape=out_shape,
        compiler_params=pltpu.CompilerParams(
            dimension_semantics=("parallel",)),
    )(*ins)

    # TODO(synk): tiny scalar reductions (loss / perplexity) and the final
    # sub-pixel interleave + NHWC->NCHW transpose stay as cheap XLA glue.
    mse = jnp.mean((q - z) ** 2)
    loss = (1.0 + commitment_cost) * mse      # q_latent + cc * e_latent (equal fwd)
    avg_probs = counts.reshape(N, 8, K)[:, 0, :].sum(axis=0) / (N * M2)
    perplexity = jnp.exp(-jnp.sum(avg_probs * jnp.log(avg_probs + 1e-10)))

    r = recon.reshape(N, 2, 2, H1, H1, 3)                  # (n, ph, pw, th, tw, c)
    r = jnp.transpose(r, (0, 3, 1, 4, 2, 5)).reshape(N, H0, H0, 3)
    x_recon = jnp.transpose(r, (0, 3, 1, 2))               # NHWC -> NCHW
    return loss, x_recon, perplexity


# ----------------------------------------------------------------------------
# Deterministic parameter init (PyTorch layouts)
# ----------------------------------------------------------------------------
def init_params(key, num_hiddens, num_residual_layers, num_residual_hiddens,
                num_embeddings, embedding_dim):
    keys = iter(jax.random.split(key, 64))

    def normal(shape, scale=0.1):
        return (scale * jax.random.normal(next(keys), shape)).astype(jnp.float32)

    nh, nrh = num_hiddens, num_residual_hiddens
    p = {}
    p["enc_c1_w"] = normal((nh // 2, 3, 4, 4)); p["enc_c1_b"] = normal((nh // 2,))
    p["enc_c2_w"] = normal((nh, nh // 2, 4, 4)); p["enc_c2_b"] = normal((nh,))
    p["enc_c3_w"] = normal((nh, nh, 3, 3));      p["enc_c3_b"] = normal((nh,))
    p["enc_res"] = [(normal((nrh, nh, 3, 3)), normal((nh, nrh, 1, 1)))
                    for _ in range(num_residual_layers)]
    p["prevq_w"] = normal((embedding_dim, nh, 1, 1))
    p["prevq_b"] = normal((embedding_dim,))
    p["embedding"] = jax.random.uniform(
        next(keys), (num_embeddings, embedding_dim),
        minval=-1.0 / num_embeddings,
        maxval=1.0 / num_embeddings).astype(jnp.float32)
    p["dec_c1_w"] = normal((nh, embedding_dim, 3, 3)); p["dec_c1_b"] = normal((nh,))
    p["dec_res"] = [(normal((nrh, nh, 3, 3)), normal((nh, nrh, 1, 1)))
                    for _ in range(num_residual_layers)]
    p["dec_t1_w"] = normal((nh, nh // 2, 4, 4))   # ConvTranspose2d: (Cin,Cout,kh,kw)
    p["dec_t1_b"] = normal((nh // 2,))
    p["dec_t2_w"] = normal((nh // 2, 3, 4, 4))
    p["dec_t2_b"] = normal((3,))
    return p


# ----------------------------------------------------------------------------
if __name__ == "__main__":
    num_hiddens = 32
    num_residual_layers = 2
    num_residual_hiddens = 8
    num_embeddings = 16
    embedding_dim = 8
    commitment_cost = 0.25
    # decay = 0  -> plain VectorQuantizer branch

    key = jax.random.PRNGKey(0)
    pkey, xkey = jax.random.split(key)
    params = init_params(pkey, num_hiddens, num_residual_layers,
                         num_residual_hiddens, num_embeddings, embedding_dim)
    x = jax.random.normal(xkey, (2, 3, 16, 16), dtype=jnp.float32)   # NCHW input

    roll_matches_jnp = detect_roll_convention()

    fwd = jax.jit(functools.partial(model_forward,
                                    commitment_cost=commitment_cost,
                                    roll_matches_jnp=roll_matches_jnp))
    loss, x_recon, perplexity = fwd(params, x)
    jax.block_until_ready((loss, x_recon, perplexity))

    assert x_recon.shape == (2, 3, 16, 16)
    assert loss.shape == () and perplexity.shape == ()
    assert bool(jnp.isfinite(loss)) and bool(jnp.isfinite(perplexity))
    assert bool(jnp.all(jnp.isfinite(x_recon)))
    print("KERNEL_OK")
</pallas_src>

<mosaic_0001>
module attributes {stable_mosaic.version = 11 : i64} {
  func.func @_roll_probe_kernel(%arg0: memref<8x128xf32, #tpu.memory_space<vmem>>, %arg1: memref<8x128xf32, #tpu.memory_space<vmem>>) attributes {dimension_semantics = [], scalar_prefetch = 0 : i64, scratch_operands = 0 : i64, tpu.core_type = #tpu.core_type<tc>} {
    %c0 = arith.constant 0 : index
    %c0_0 = arith.constant 0 : index
    %0 = vector.load %arg0[%c0, %c0_0] : memref<8x128xf32, #tpu.memory_space<vmem>>, vector<8x128xf32>
    %c1_i32 = arith.constant 1 : i32
    %1 = tpu.dynamic_rotate %0 by %c1_i32 dim 0 : vector<8x128xf32>, i32 -> vector<8x128xf32>
    %c0_1 = arith.constant 0 : index
    %c0_2 = arith.constant 0 : index
    %2 = vector.load %arg1[%c0_1, %c0_2] : memref<8x128xf32, #tpu.memory_space<vmem>>, vector<8x128xf32>
    tpu.vector_store %arg1[%c0_1, %c0_2], %1 {strides = array<i32>} : memref<8x128xf32, #tpu.memory_space<vmem>>, vector<8x128xf32>,
    return
  }
}

</mosaic_0001>

<bundles_post_ra>
// kernel: tpu_custom_call.1
= control target key start
LH: loop header
LB: loop body
LE: loop exit
PB: predicated region body
PF: predicated region fallthrough
CT: control target
= control target key end

     0   :  { %6 = vsyncpa [#allocation3], 0  ;;  %s125_s0 = inlined_call_operand.hbm [shape: f32[8,128], index: 0, kind: input, shape index: {}]   ;;  %s126_s1 = inlined_call_operand.hbm [shape: f32[8,128], index: 1, kind: output, shape index: {}]  }
   0x1   :  { %7 = vsyncpa [#allocation4], 0  ;;  %s89_s6 = smov [#allocation2]   ;;  %s41_s10 = scalar_lea.hbm %s125_s0, 128 }
   0x2   :  { %s14_s7 = sshll.u32 %s89_s6, 4  ;;  %p42_p0 = scmp.ne.s32.totalorder %s125_s0, %s41_s10  ;;  %s15_s7 = int_to_ptr.vmem [resolvable:$true] %s14_s7 }
   0x3   :  { %p45_p1 = scmp.lt.u32.totalorder %s41_s10, %s125_s0 }
   0x5   :  { %p47_p2 = pnand %p45_p1, %p42_p0 }
   0x7   :  { %50 = shalt.err (!%p47_p2)
}
   0x8   :  { %s51_s15 = scalar_lea.vmem %s15_s7, 128  ;;  %p56_p4 = scmp.lt.s32.totalorder %s15_s7, %s15_s7 }
   0x9   :  { %p52_p3 = scmp.ne.s32.totalorder %s15_s7, %s51_s15  ;;  %p57_p5 = scmp.lt.s32.totalorder %s51_s15, %s51_s15 }
   0xb   :  { %p58_p6 = por %p57_p5, %p56_p4 }
   0xd   :  { %p59_p7 = pnand %p58_p6, %p52_p3 }
   0xf   :  { %62 = shalt.err (!%p59_p7)
}
  0x10   :  { %17 = dma.hbm_to_vmem [thread:$0]  %s125_s0, 128, %s15_s7, [#allocation3]  }
  0x11   :  { %85 = dma.done.wait [#allocation3], 128  }
  0x12   :  { %86 = vsyncadd [#allocation3], 4294967168  ;;  %s90_s18 = smov [#allocation5]   ;;  %v21_v0 = vld [vmem:[#allocation2] sm:$0xff] }
  0x13   :  { %s30_s19 = sshll.u32 %s90_s18, 4  ;;  %v22_v1 = vrot.slane %v21_v0, 7  ;;  %s31_s19 = int_to_ptr.vmem [resolvable:$true] %s30_s19 }
  0x14   :  { %s63_s20 = scalar_lea.vmem %s31_s19, 128  ;;  %p68_p9 = scmp.lt.s32.totalorder %s31_s19, %s31_s19 }
  0x15   :  { %23 = vst [vmem:[#allocation5] sm:$0xff] %v22_v1  ;;  %p64_p8 = scmp.ne.s32.totalorder %s31_s19, %s63_s20  ;;  %p69_p10 = scmp.lt.s32.totalorder %s63_s20, %s63_s20 }
  0x17   :  { %p70_p11 = por %p69_p10, %p68_p9 }
  0x19   :  { %p71_p12 = pnand %p70_p11, %p64_p8 }
  0x1b   :  { %74 = shalt.err (!%p71_p12)
}
  0x1c   :  { %s75_s23 = scalar_lea.hbm %s126_s1, 128 }
  0x1d   :  { %p76_p13 = scmp.ne.s32.totalorder %s126_s1, %s75_s23  ;;  %p79_p0 = scmp.lt.u32.totalorder %s75_s23, %s126_s1 }
  0x1f   :  { %p81_p1 = pnand %p79_p0, %p76_p13 }
  0x21   :  { %84 = shalt.err (!%p81_p1)
}
  0x22   :  { %33 = dma.vmem_to_hbm [thread:$0]  %s31_s19, 128, %s126_s1, [#allocation4]  }
  0x23   :  { %87 = dma.done.wait [#allocation4], 128  }
  0x24   :  { %88 = vsyncadd [#allocation4], 4294967168 }
  0x25   :  { %37 = vsyncpa [#allocation3], 1 }
  0x26   :  { %38 = vsyncpa [#allocation4], 1 }

</bundles_post_ra>
